<compile_context>
chip_gen: v7x
topology: tpu7x:2x2x1
jax: 0.10.0
libtpu: 0.0.40
codegen_flags: <defaults>
</compile_context>

<pallas_src>
import functools

import jax
import jax.numpy as jnp
from jax.experimental import pallas as pl
from jax.experimental.pallas import tpu as pltpu


def _make_fused_mlp_kernel(layer_is_skip):
    """Kernel computing the whole MLP for one row tile.

    Refs: (x_ref, z_ref, *param_refs, o_ref); param_refs is, per layer,
    (w, b) for plain layers and (w_y, w_z, b) for skip layers (weights in the
    MXU compute dtype, biases in f32).  The layer loop is unrolled at trace
    time; intermediate activations never leave VMEM/vregs.
    """
    n_layers = len(layer_is_skip)

    def kernel(x_ref, z_ref, *refs):
        o_ref = refs[-1]
        p_refs = refs[:-1]
        compute_dtype = x_ref.dtype

        y = x_ref[...]
        idx = 0
        for li, is_skip in enumerate(layer_is_skip):
            if is_skip:
                # Split-weight skip: relu(y @ W_top + z @ W_bot + b) ==
                # relu(concat(y, z) @ W + b), but without materializing the concat.
                w_y, w_z, b = p_refs[idx], p_refs[idx + 1], p_refs[idx + 2]
                idx += 3
                acc = jnp.dot(y, w_y[...], preferred_element_type=jnp.float32)
                acc = acc + jnp.dot(z_ref[...], w_z[...],
                                    preferred_element_type=jnp.float32)
            else:
                w, b = p_refs[idx], p_refs[idx + 1]
                idx += 2
                acc = jnp.dot(y, w[...], preferred_element_type=jnp.float32)

            act = jnp.maximum(acc + b[...], 0.0)        # bias + ReLU in f32
            if li == n_layers - 1:
                o_ref[...] = act.astype(o_ref.dtype)    # single lane-dense store
            else:
                y = act.astype(compute_dtype)           # bf16 operand for next MXU pass

    return kernel


def prepare_params(params, input_skips, skip_dim, *, compute_dtype=jnp.bfloat16):
    """Flatten + pre-split params ONCE, outside the per-call forward.

    Skip-layer weights are split into (w_y, w_z) so the kernel never builds
    the (y, z) concatenation.  Weights are cast to the MXU compute dtype;
    biases stay f32 (bias add / ReLU run in f32 on the VPU).
    """
    skips = set(input_skips)
    assert 0 not in skips, "layer 0 cannot be a skip layer"
    hidden_dim = params[0][0].shape[1]

    flat_params = []
    layer_is_skip = []
    for li, (w, b) in enumerate(params):
        b = b.reshape(1, -1).astype(jnp.float32)
        if li in skips:
            assert w.shape[0] == hidden_dim + skip_dim, (
                f"skip layer {li}: expected fan-in {hidden_dim + skip_dim}, "
                f"got {w.shape[0]}")
            flat_params += [w[:hidden_dim].astype(compute_dtype),
                            w[hidden_dim:].astype(compute_dtype), b]
            layer_is_skip.append(True)
        else:
            if li > 0:
                assert w.shape[0] == hidden_dim, (
                    f"layer {li}: expected fan-in {hidden_dim}, got {w.shape[0]}")
            flat_params += [w.astype(compute_dtype), b]
            layer_is_skip.append(False)
    return tuple(flat_params), tuple(layer_is_skip)


def mlp_with_input_skips_forward(flat_params, x, z, *, layer_is_skip,
                                 tm=2048, out_dtype=None):
    """y = x; per layer: (optionally use skip z) -> linear -> relu.

    Whole MLP in one Pallas call, tiled only over rows.  `flat_params` /
    `layer_is_skip` come from prepare_params().
    """
    n, input_dim = x.shape
    skip_dim = z.shape[-1]
    compute_dtype = flat_params[0].dtype
    hidden_dim = flat_params[0].shape[1]
    out_dim = flat_params[-1].shape[1]
    if out_dtype is None:
        out_dtype = x.dtype  # bf16 here halves the only HBM writeback, if the consumer tolerates it

    # bf16 (or chosen compute dtype) MXU operands; accumulation stays f32.
    x = x.astype(compute_dtype)
    z = z.astype(compute_dtype)

    # Row tiling: no host-side padding; pl.cdiv grid + masked trailing block.
    tm = max(8, min(tm, pl.cdiv(n, 8) * 8))
    if n >= 16:
        # Keep >= 2 row tiles so ("parallel",) can shard across both v7x TCs.
        tm = min(tm, max(8, pl.cdiv(pl.cdiv(n, 2), 8) * 8))
    grid = (pl.cdiv(n, tm),)

    in_specs = [
        pl.BlockSpec((tm, input_dim), lambda i: (i, 0)),   # row tile of x
        pl.BlockSpec((tm, skip_dim), lambda i: (i, 0)),    # row tile of z
    ]
    # Whole-array, grid-invariant weight/bias blocks (fetched once, resident).
    in_specs += [pl.BlockSpec(p.shape, lambda i: (0, 0)) for p in flat_params]
    out_specs = pl.BlockSpec((tm, out_dim), lambda i: (i, 0))

    # VMEM budget: double-buffered x/z/out row blocks, resident params (x2),
    # plus the kernel-internal live activation + f32 accumulator, with 4x
    # headroom, clamped to [32, 48] MiB (48 MiB is safe on v7x's 64 MiB VMEM).
    cd = jnp.dtype(compute_dtype).itemsize
    od = jnp.dtype(out_dtype).itemsize
    act_bytes = 2 * tm * ((input_dim + skip_dim) * cd + out_dim * od)
    interm_bytes = 2 * tm * max(hidden_dim, out_dim) * 4
    param_bytes = 2 * sum(int(p.size) * p.dtype.itemsize for p in flat_params)
    vmem_limit = int(min(48 * 2**20,
                         max(32 * 2**20,
                             4 * (act_bytes + interm_bytes + param_bytes))))

    return pl.pallas_call(
        _make_fused_mlp_kernel(tuple(layer_is_skip)),
        out_shape=jax.ShapeDtypeStruct((n, out_dim), out_dtype),
        grid_spec=pltpu.PrefetchScalarGridSpec(
            num_scalar_prefetch=0,
            grid=grid,
            in_specs=in_specs,
            out_specs=out_specs,
        ),
        compiler_params=pltpu.CompilerParams(
            dimension_semantics=("parallel",),   # row tiles shard across v7x TCs
            vmem_limit_bytes=vmem_limit,
        ),
    )(x, z, *flat_params)


def init_mlp_with_input_skips(key, n_layers, input_dim, output_dim, skip_dim,
                              hidden_dim, input_skips):
    """Deterministic init mirroring torch.nn.Linear's default
    (uniform in +/- 1/sqrt(fan_in)).  Weights stored as (in, out)."""
    params = []
    skips = set(input_skips)
    for li in range(n_layers):
        if li == 0:
            dimin, dimout = input_dim, hidden_dim
        elif li in skips:
            dimin, dimout = hidden_dim + skip_dim, hidden_dim
        else:
            dimin, dimout = hidden_dim, hidden_dim
        key, kw, kb = jax.random.split(key, 3)
        bound = 1.0 / jnp.sqrt(float(dimin))
        w = jax.random.uniform(kw, (dimin, dimout), jnp.float32, -bound, bound)
        b = jax.random.uniform(kb, (1, dimout), jnp.float32, -bound, bound)
        params.append((w, b))
    return params


def _reference_forward(params, x, z, input_skips, compute_dtype=jnp.float32):
    """Pure-JAX reference matching the torch module (with optional operand
    cast to `compute_dtype` to mirror the kernel's bf16-operand path)."""
    skips = set(input_skips)
    y = x
    for li, (w, b) in enumerate(params):
        if li in skips:
            y = jnp.concatenate((y, z), axis=-1)
        acc = jnp.dot(y.astype(compute_dtype), w.astype(compute_dtype),
                      preferred_element_type=jnp.float32)
        y = jnp.maximum(acc + b.reshape(1, -1).astype(jnp.float32), 0.0)
    return y


if __name__ == "__main__":
    # Small shapes consistent with the module's forward:
    #   x: (N, input_dim), z: (N, skip_dim)  ->  output: (N, hidden_dim)
    # hidden_dim is a multiple of 128 so the single HBM store is lane-dense;
    # N is deliberately not a multiple of the row tile to exercise the
    # masked trailing block and the >=2-tile megacore split.
    n_layers = 4
    input_dim = 64
    skip_dim = 64
    hidden_dim = 128
    output_dim = hidden_dim  # note: output_dim is unused by the torch module's layers
    input_skips = (2,)
    N = 500

    key = jax.random.PRNGKey(0)
    key, kx, kz = jax.random.split(key, 3)
    x = jax.random.normal(kx, (N, input_dim), jnp.float32)
    z = jax.random.normal(kz, (N, skip_dim), jnp.float32)

    params = init_mlp_with_input_skips(
        key, n_layers, input_dim, output_dim, skip_dim, hidden_dim, input_skips)

    # --- bf16-operand path (production default: bf16 MXU, f32 accumulate) ---
    flat_bf16, layer_is_skip = prepare_params(
        params, input_skips, skip_dim, compute_dtype=jnp.bfloat16)
    fwd_bf16 = jax.jit(functools.partial(
        mlp_with_input_skips_forward, layer_is_skip=layer_is_skip, tm=2048))
    out_bf16 = jax.block_until_ready(fwd_bf16(flat_bf16, x, z))
    ref_bf16 = _reference_forward(params, x, z, input_skips,
                                  compute_dtype=jnp.bfloat16)
    assert out_bf16.shape == (N, hidden_dim)
    assert jnp.allclose(out_bf16, ref_bf16, atol=2e-2, rtol=2e-2), float(
        jnp.max(jnp.abs(out_bf16 - ref_bf16)))

    # --- f32-operand path (tight check against the exact module semantics) ---
    flat_f32, _ = prepare_params(
        params, input_skips, skip_dim, compute_dtype=jnp.float32)
    fwd_f32 = jax.jit(functools.partial(
        mlp_with_input_skips_forward, layer_is_skip=layer_is_skip, tm=2048))
    out_f32 = jax.block_until_ready(fwd_f32(flat_f32, x, z))
    ref_f32 = _reference_forward(params, x, z, input_skips)
    assert jnp.allclose(out_f32, ref_f32, atol=1e-2, rtol=1e-2), float(
        jnp.max(jnp.abs(out_f32 - ref_f32)))

    print("KERNEL_OK")
</pallas_src>

<mosaic_0001>
module attributes {stable_mosaic.version = 11 : i64} {
  func.func @kernel(%arg0: i32, %arg1: memref<256x64xbf16, #tpu.memory_space<vmem>>, %arg2: memref<256x64xbf16, #tpu.memory_space<vmem>>, %arg3: memref<64x128xbf16, #tpu.memory_space<vmem>>, %arg4: memref<1x128xf32, #tpu.memory_space<vmem>>, %arg5: memref<128x128xbf16, #tpu.memory_space<vmem>>, %arg6: memref<1x128xf32, #tpu.memory_space<vmem>>, %arg7: memref<128x128xbf16, #tpu.memory_space<vmem>>, %arg8: memref<64x128xbf16, #tpu.memory_space<vmem>>, %arg9: memref<1x128xf32, #tpu.memory_space<vmem>>, %arg10: memref<128x128xbf16, #tpu.memory_space<vmem>>, %arg11: memref<1x128xf32, #tpu.memory_space<vmem>>, %arg12: memref<256x128xf32, #tpu.memory_space<vmem>>) attributes {dimension_semantics = [#tpu.dimension_semantics<parallel>], iteration_bounds = array<i64: 2>, scalar_prefetch = 0 : i64, scratch_operands = 0 : i64, tpu.core_type = #tpu.core_type<tc>, window_params = [{transform_indices = @transform_0, window_bounds = array<i64: 256, 64>}, {transform_indices = @transform_1, window_bounds = array<i64: 256, 64>}, {pipeline_mode = #tpu.pipeline_mode<synchronous>, transform_indices = @transform_2, window_bounds = array<i64: 64, 128>}, {pipeline_mode = #tpu.pipeline_mode<synchronous>, transform_indices = @transform_3, window_bounds = array<i64: 1, 128>}, {pipeline_mode = #tpu.pipeline_mode<synchronous>, transform_indices = @transform_4, window_bounds = array<i64: 128, 128>}, {pipeline_mode = #tpu.pipeline_mode<synchronous>, transform_indices = @transform_5, window_bounds = array<i64: 1, 128>}, {pipeline_mode = #tpu.pipeline_mode<synchronous>, transform_indices = @transform_6, window_bounds = array<i64: 128, 128>}, {pipeline_mode = #tpu.pipeline_mode<synchronous>, transform_indices = @transform_7, window_bounds = array<i64: 64, 128>}, {pipeline_mode = #tpu.pipeline_mode<synchronous>, transform_indices = @transform_8, window_bounds = array<i64: 1, 128>}, {pipeline_mode = #tpu.pipeline_mode<synchronous>, transform_indices = @transform_9, window_bounds = array<i64: 128, 128>}, {pipeline_mode = #tpu.pipeline_mode<synchronous>, transform_indices = @transform_10, window_bounds = array<i64: 1, 128>}, {transform_indices = @transform_11, window_bounds = array<i64: 256, 128>}]} {
    %c0 = arith.constant 0 : index
    %c0_0 = arith.constant 0 : index
    %0 = vector.load %arg1[%c0, %c0_0] : memref<256x64xbf16, #tpu.memory_space<vmem>>, vector<256x64xbf16>
    %c0_1 = arith.constant 0 : index
    %c0_2 = arith.constant 0 : index
    %1 = vector.load %arg3[%c0_1, %c0_2] : memref<64x128xbf16, #tpu.memory_space<vmem>>, vector<64x128xbf16>
    %cst = arith.constant dense<0.000000e+00> : vector<256x128xf32>
    %2 = tpu.matmul %0, %1, %cst {dimension_numbers = #tpu.dot_dimension_numbers<[1], [0], [0], [1], [0, 0, 1, 1], [], []>} : vector<256x64xbf16>, vector<64x128xbf16>, vector<256x128xf32> -> vector<256x128xf32>
    %c0_3 = arith.constant 0 : index
    %c0_4 = arith.constant 0 : index
    %3 = vector.load %arg4[%c0_3, %c0_4] : memref<1x128xf32, #tpu.memory_space<vmem>>, vector<1x128xf32>
    %4 = vector.broadcast %3 : vector<1x128xf32> to vector<256x128xf32>
    %5 = arith.addf %2, %4 : vector<256x128xf32>
    %cst_5 = arith.constant 0.000000e+00 : f32
    %6 = vector.broadcast %cst_5 : f32 to vector<256x128xf32>
    %7 = arith.maximumf %5, %6 : vector<256x128xf32>
    %8 = arith.truncf %7 : vector<256x128xf32> to vector<256x128xbf16>
    %c0_6 = arith.constant 0 : index
    %c0_7 = arith.constant 0 : index
    %9 = vector.load %arg5[%c0_6, %c0_7] : memref<128x128xbf16, #tpu.memory_space<vmem>>, vector<128x128xbf16>
    %cst_8 = arith.constant dense<0.000000e+00> : vector<256x128xf32>
    %10 = tpu.matmul %8, %9, %cst_8 {dimension_numbers = #tpu.dot_dimension_numbers<[1], [0], [0], [1], [0, 0, 1, 1], [], []>} : vector<256x128xbf16>, vector<128x128xbf16>, vector<256x128xf32> -> vector<256x128xf32>
    %c0_9 = arith.constant 0 : index
    %c0_10 = arith.constant 0 : index
    %11 = vector.load %arg6[%c0_9, %c0_10] : memref<1x128xf32, #tpu.memory_space<vmem>>, vector<1x128xf32>
    %12 = vector.broadcast %11 : vector<1x128xf32> to vector<256x128xf32>
    %13 = arith.addf %10, %12 : vector<256x128xf32>
    %cst_11 = arith.constant 0.000000e+00 : f32
    %14 = vector.broadcast %cst_11 : f32 to vector<256x128xf32>
    %15 = arith.maximumf %13, %14 : vector<256x128xf32>
    %16 = arith.truncf %15 : vector<256x128xf32> to vector<256x128xbf16>
    %c0_12 = arith.constant 0 : index
    %c0_13 = arith.constant 0 : index
    %17 = vector.load %arg7[%c0_12, %c0_13] : memref<128x128xbf16, #tpu.memory_space<vmem>>, vector<128x128xbf16>
    %cst_14 = arith.constant dense<0.000000e+00> : vector<256x128xf32>
    %18 = tpu.matmul %16, %17, %cst_14 {dimension_numbers = #tpu.dot_dimension_numbers<[1], [0], [0], [1], [0, 0, 1, 1], [], []>} : vector<256x128xbf16>, vector<128x128xbf16>, vector<256x128xf32> -> vector<256x128xf32>
    %c0_15 = arith.constant 0 : index
    %c0_16 = arith.constant 0 : index
    %19 = vector.load %arg2[%c0_15, %c0_16] : memref<256x64xbf16, #tpu.memory_space<vmem>>, vector<256x64xbf16>
    %c0_17 = arith.constant 0 : index
    %c0_18 = arith.constant 0 : index
    %20 = vector.load %arg8[%c0_17, %c0_18] : memref<64x128xbf16, #tpu.memory_space<vmem>>, vector<64x128xbf16>
    %cst_19 = arith.constant dense<0.000000e+00> : vector<256x128xf32>
    %21 = tpu.matmul %19, %20, %cst_19 {dimension_numbers = #tpu.dot_dimension_numbers<[1], [0], [0], [1], [0, 0, 1, 1], [], []>} : vector<256x64xbf16>, vector<64x128xbf16>, vector<256x128xf32> -> vector<256x128xf32>
    %22 = arith.addf %18, %21 : vector<256x128xf32>
    %c0_20 = arith.constant 0 : index
    %c0_21 = arith.constant 0 : index
    %23 = vector.load %arg9[%c0_20, %c0_21] : memref<1x128xf32, #tpu.memory_space<vmem>>, vector<1x128xf32>
    %24 = vector.broadcast %23 : vector<1x128xf32> to vector<256x128xf32>
    %25 = arith.addf %22, %24 : vector<256x128xf32>
    %cst_22 = arith.constant 0.000000e+00 : f32
    %26 = vector.broadcast %cst_22 : f32 to vector<256x128xf32>
    %27 = arith.maximumf %25, %26 : vector<256x128xf32>
    %28 = arith.truncf %27 : vector<256x128xf32> to vector<256x128xbf16>
    %c0_23 = arith.constant 0 : index
    %c0_24 = arith.constant 0 : index
    %29 = vector.load %arg10[%c0_23, %c0_24] : memref<128x128xbf16, #tpu.memory_space<vmem>>, vector<128x128xbf16>
    %cst_25 = arith.constant dense<0.000000e+00> : vector<256x128xf32>
    %30 = tpu.matmul %28, %29, %cst_25 {dimension_numbers = #tpu.dot_dimension_numbers<[1], [0], [0], [1], [0, 0, 1, 1], [], []>} : vector<256x128xbf16>, vector<128x128xbf16>, vector<256x128xf32> -> vector<256x128xf32>
    %c0_26 = arith.constant 0 : index
    %c0_27 = arith.constant 0 : index
    %31 = vector.load %arg11[%c0_26, %c0_27] : memref<1x128xf32, #tpu.memory_space<vmem>>, vector<1x128xf32>
    %32 = vector.broadcast %31 : vector<1x128xf32> to vector<256x128xf32>
    %33 = arith.addf %30, %32 : vector<256x128xf32>
    %cst_28 = arith.constant 0.000000e+00 : f32
    %34 = vector.broadcast %cst_28 : f32 to vector<256x128xf32>
    %35 = arith.maximumf %33, %34 : vector<256x128xf32>
    %c0_29 = arith.constant 0 : index
    %c0_30 = arith.constant 0 : index
    %36 = vector.load %arg12[%c0_29, %c0_30] : memref<256x128xf32, #tpu.memory_space<vmem>>, vector<256x128xf32>
    tpu.vector_store %arg12[%c0_29, %c0_30], %35 {strides = array<i32>} : memref<256x128xf32, #tpu.memory_space<vmem>>, vector<256x128xf32>,
    return
  }
  func.func @transform_0(%arg0: i32) -> (i32, i32) {
    %c0_i32 = arith.constant 0 : i32
    %c0_i32_0 = arith.constant 0 : i32
    return %arg0, %c0_i32 : i32, i32
  }
  func.func @transform_1(%arg0: i32) -> (i32, i32) {
    %c0_i32 = arith.constant 0 : i32
    %c0_i32_0 = arith.constant 0 : i32
    return %arg0, %c0_i32 : i32, i32
  }
  func.func @transform_2(%arg0: i32) -> (i32, i32) {
    %c0_i32 = arith.constant 0 : i32
    %c0_i32_0 = arith.constant 0 : i32
    %c0_i32_1 = arith.constant 0 : i32
    return %c0_i32, %c0_i32_0 : i32, i32
  }
  func.func @transform_3(%arg0: i32) -> (i32, i32) {
    %c0_i32 = arith.constant 0 : i32
    %c0_i32_0 = arith.constant 0 : i32
    %c0_i32_1 = arith.constant 0 : i32
    return %c0_i32, %c0_i32_0 : i32, i32
  }
  func.func @transform_4(%arg0: i32) -> (i32, i32) {
    %c0_i32 = arith.constant 0 : i32
    %c0_i32_0 = arith.constant 0 : i32
    %c0_i32_1 = arith.constant 0 : i32
    return %c0_i32, %c0_i32_0 : i32, i32
  }
  func.func @transform_5(%arg0: i32) -> (i32, i32) {
    %c0_i32 = arith.constant 0 : i32
    %c0_i32_0 = arith.constant 0 : i32
    %c0_i32_1 = arith.constant 0 : i32
    return %c0_i32, %c0_i32_0 : i32, i32
  }
  func.func @transform_6(%arg0: i32) -> (i32, i32) {
    %c0_i32 = arith.constant 0 : i32
    %c0_i32_0 = arith.constant 0 : i32
    %c0_i32_1 = arith.constant 0 : i32
    return %c0_i32, %c0_i32_0 : i32, i32
  }
  func.func @transform_7(%arg0: i32) -> (i32, i32) {
    %c0_i32 = arith.constant 0 : i32
    %c0_i32_0 = arith.constant 0 : i32
    %c0_i32_1 = arith.constant 0 : i32
    return %c0_i32, %c0_i32_0 : i32, i32
  }
  func.func @transform_8(%arg0: i32) -> (i32, i32) {
    %c0_i32 = arith.constant 0 : i32
    %c0_i32_0 = arith.constant 0 : i32
    %c0_i32_1 = arith.constant 0 : i32
    return %c0_i32, %c0_i32_0 : i32, i32
  }
  func.func @transform_9(%arg0: i32) -> (i32, i32) {
    %c0_i32 = arith.constant 0 : i32
    %c0_i32_0 = arith.constant 0 : i32
    %c0_i32_1 = arith.constant 0 : i32
    return %c0_i32, %c0_i32_0 : i32, i32
  }
  func.func @transform_10(%arg0: i32) -> (i32, i32) {
    %c0_i32 = arith.constant 0 : i32
    %c0_i32_0 = arith.constant 0 : i32
    %c0_i32_1 = arith.constant 0 : i32
    return %c0_i32, %c0_i32_0 : i32, i32
  }
  func.func @transform_11(%arg0: i32) -> (i32, i32) {
    %c0_i32 = arith.constant 0 : i32
    %c0_i32_0 = arith.constant 0 : i32
    return %arg0, %c0_i32 : i32, i32
  }
}

</mosaic_0001>

<bundles_post_ra>
// kernel: mlp_with_input_skips_forward.1
= control target key start
LH: loop header
LB: loop body
LE: loop exit
PB: predicated region body
PF: predicated region fallthrough
CT: control target
= control target key end

     0   :  { %s3415_s0 = inlined_call_operand.vmem [shape: bf16[500,64], index: 0, kind: input, shape index: {}]   ;;  %s3416_s1 = inlined_call_operand.vmem [shape: bf16[500,64], index: 1, kind: input, shape index: {}]   ;;  %s3417_s2 = inlined_call_operand.vmem [shape: bf16[64,128], index: 2, kind: input, shape index: {}]   ;;  %s3418_s3 = inlined_call_operand.vmem [shape: f32[1,128], index: 3, kind: input, shape index: {}]   ;;  %s3419_s4 = inlined_call_operand.vmem [shape: bf16[128,128], index: 4, kind: input, shape index: {}]   ;;  %s3420_s5 = inlined_call_operand.vmem [shape: f32[1,128], index: 5, kind: input, shape index: {}]   ;;  %s3421_s6 = inlined_call_operand.vmem [shape: bf16[128,128], index: 6, kind: input, shape index: {}]   ;;  %s3422_s7 = inlined_call_operand.vmem [shape: bf16[64,128], index: 7, kind: input, shape index: {}]   ;;  %s3423_s8 = inlined_call_operand.vmem [shape: f32[1,128], index: 8, kind: input, shape index: {}]   ;;  %s3424_s9 = inlined_call_operand.vmem [shape: bf16[128,128], index: 9, kind: input, shape index: {}]   ;;  %s3425_s10 = inlined_call_operand.vmem [shape: f32[1,128], index: 10, kind: input, shape index: {}]   ;;  %s3426_s11 = inlined_call_operand.hbm [shape: f32[500,128], index: 11, kind: output, shape index: {}]  }
   0x1   :  { %3427 = sst [smem:[#allocation5_spill]] %s3415_s0 }
   0x2   :  { %16 = vsyncpa [#allocation3], 0 }
   0x3   :  { %18 = vsyncpa [#allocation3 + $0x1], 0  ;;  %s2925_s17 = smov 0   ;;  %s2927_s18 = smov 0  }
   0x4   :  { %s2929_s19 = smov 0   ;;  %s2931_s20 = smov 0  }
   0x5 LB: > { %s2946_s21 = sadd.s32 4294967295, %s2860_s20   ;;  %s2199_s22 = sadd.s32 4294967294, %s2860_s20   ;;  %s2860_s20 = sphi %s2931_s20, %s3434_s20   ;;  %s2856_s19 = sphi %s2929_s19, %s3433_s19   ;;  %s2852_s18 = sphi %s2927_s18, %s3432_s18   ;;  %s2848_s17 = sphi %s2925_s17, %s3431_s17  }
   0x6   : > { %s2950_s23 = sadd.s32 1, %s2860_s20   ;;  %s272_s24 = sadd.s32 1, %s2856_s19 }
   0x7   : > { %s269_s25 = ssub.s32 %s2860_s20, %s2950_s23  ;;  %p282_p0 = scmp.ne.s32.totalorder %s2856_s19, %s2852_s18 }
   0x8   : > { %p270_p1 = scmp.eq.s32.totalorder %s269_s25, 0  ;;  %p283_p2 = scmp.eq.s32.totalorder %s2946_s21, 1 }
   0x9   : > { %p288_p3 = scmp.ne.s32.totalorder %s2852_s18, %s2848_s17  ;;  %p289_p4 = scmp.eq.s32.totalorder %s2199_s22, 1 }
   0xa   : > { %s2961_s26 = scalar_select %p270_p1, %s2856_s19, %s272_s24  }
   0xb   : > { %p2963_p5 = por %p283_p2, %p282_p0  ;;  %p2967_p6 = por %p289_p4, %p288_p3 }
   0xc   : > { %p2202_p7 = scmp.ge.s32.totalorder %s2860_s20, 1  ;;  %p368_p8 = scmp.lt.s32.totalorder %s2860_s20, 3 }
   0xe   : > { %p369_p9 = pnand %p2202_p7, %p368_p8 }
   0xf   : > { %v2734_v0 = vld [vmem:[%s3417_s2] sm:$0xff] (!%p369_p9)   ;;  %s2977_s12 = sshll.u32 (!%p369_p9), %s2946_s21, 5  ;;  %v2735_v1 = vld [vmem:[%s3417_s2 + $0x8] sm:$0xff] (!%p369_p9)   ;;  %v2736_v2 = vld [vmem:[%s3417_s2 + $0x10] sm:$0xff] (!%p369_p9)   ;;  %s3430_s0 = sld [smem:[#allocation5_spill]] (!%p369_p9)  ;;  %vm606_vm0 = vcmask (!%p369_p9), 523264  }
  0x10   : > { %372 = sbr.rel (%p369_p9) target bundleno = 1002 (0x3ea), region = 64  ;;  %p426_p10 = scmp.lt.s32.totalorder (!%p369_p9), %s2977_s12, 62  ;;  %2430 = vmatprep.subr.bf16.mxu0 (!%p369_p9), %v2734_v0  ;;  %2654 = vmatprep.subr.bf16.mxu1 (!%p369_p9), %v2734_v0  ;;  %v2737_v4 = vld [vmem:[%s3417_s2 + $0x18] sm:$0xff] (!%p369_p9)   ;;  %v2754_v5 = vld [vmem:[%s3419_s4] sm:$0xff] (!%p369_p9)   ;;  %v2755_v9 = vld [vmem:[%s3419_s4 + $0x8] sm:$0xff] (!%p369_p9)  }
  0x11   : > { %2431 = vmatpush3.bf16.msra.mxu0 (!%p369_p9), %v2734_v0  ;;  %2658 = vmatpush3.bf16.msra.mxu1 (!%p369_p9), %v2734_v0  ;;  %v2756_v12 = vld [vmem:[%s3419_s4 + $0x10] sm:$0xff] (!%p369_p9)   ;;  %v2757_v17 = vld [vmem:[%s3419_s4 + $0x18] sm:$0xff] (!%p369_p9)   ;;  %v2758_v18 = vld [vmem:[%s3419_s4 + $0x20] sm:$0xff] (!%p369_p9)   ;;  %s418_s25 = sand.u32 (!%p369_p9), 1, %s2852_s18  }
  0x12   : > { %2432 = vmatprep.subr.bf16.mxu0 (!%p369_p9), %v2735_v1  ;;  %2655 = vmatprep.subr.bf16.mxu1 (!%p369_p9), %v2735_v1  ;;  %v2759_v23 = vld [vmem:[%s3419_s4 + $0x28] sm:$0xff] (!%p369_p9)   ;;  %v2760_v26 = vld [vmem:[%s3419_s4 + $0x30] sm:$0xff] (!%p369_p9)   ;;  %v2761_v27 = vld [vmem:[%s3419_s4 + $0x38] sm:$0xff] (!%p369_p9)   ;;  %s2203_s13 = sshll.u32 (!%p369_p9), %s418_s25, 8  ;;  %s3354_s14 = scalar_lea.sflag (!%p369_p9), [#allocation3], %s418_s25 }
  0x13   : > { %v2762_v28 = vld [vmem:[%s3422_s7] sm:$0xff] (!%p369_p9)   ;;  %v2763_v29 = vld [vmem:[%s3422_s7 + $0x8] sm:$0xff] (!%p369_p9)   ;;  %v2764_v31 = vld [vmem:[%s3422_s7 + $0x10] sm:$0xff] (!%p369_p9)  }
  0x14   : > { %v2765_v32 = vld [vmem:[%s3422_s7 + $0x18] sm:$0xff] (!%p369_p9)   ;;  %v2767_v33 = vld [vmem:[%s3421_s6] sm:$0xff] (!%p369_p9)   ;;  %v2770_v36 = vld [vmem:[%s3421_s6 + $0x8] sm:$0xff] (!%p369_p9)  }
  0x15   : > { %2433 = vmatpush3.bf16.msra.mxu0 (!%p369_p9), %v2735_v1  ;;  %2659 = vmatpush3.bf16.msra.mxu1 (!%p369_p9), %v2735_v1  ;;  %v2773_v37 = vld [vmem:[%s3421_s6 + $0x10] sm:$0xff] (!%p369_p9)   ;;  %v2776_v40 = vld [vmem:[%s3421_s6 + $0x18] sm:$0xff] (!%p369_p9)   ;;  %v2779_v41 = vld [vmem:[%s3421_s6 + $0x20] sm:$0xff] (!%p369_p9)  }
  0x16   : > { %2434 = vmatprep.subr.bf16.mxu0 (!%p369_p9), %v2736_v2  ;;  %2656 = vmatprep.subr.bf16.mxu1 (!%p369_p9), %v2736_v2  ;;  %v2782_v44 = vld [vmem:[%s3421_s6 + $0x28] sm:$0xff] (!%p369_p9)   ;;  %v2785_v45 = vld [vmem:[%s3421_s6 + $0x30] sm:$0xff] (!%p369_p9)   ;;  %v3124_v52 = vld [vmem:[%s3418_s3] ss:$0 sm:$0xff] (!%p369_p9) }
  0x17   : > { %s2984_s15 = scalar_select %p426_p10, %s2977_s12, 62 }
  0x18   : > { %s2114_s22 = ssub.s32 (%p2963_p5), 63, %s2977_s12 }
  0x19   : > { %s2205_s24 = sshll.u32 %s2984_s15, 2  ;;  %2435 = vmatpush3.bf16.msra.mxu0 %v2736_v2  ;;  %2660 = vmatpush3.bf16.msra.mxu1 %v2736_v2  ;;  %p2115_p11 = scmp.lt.s32.totalorder (%p2963_p5), %s2114_s22, 32 }
  0x1a   : > { %s2995_s30 = scalar_lea.vmem %s3430_s0, %s2205_s24  ;;  %2436 = vmatprep.subr.bf16.mxu0 %v2737_v4  ;;  %2657 = vmatprep.subr.bf16.mxu1 %v2737_v4  ;;  %s3042_s16 = scalar_lea.vmem %s3416_s1, %s2205_s24 }
  0x1b   : > { %v2738_v3 = vld [vmem:[%s2995_s30] sm:$0xff]   ;;  %v2739_v6 = vld [vmem:[%s2995_s30 + $0x8] sm:$0xff]   ;;  %v2740_v7 = vld [vmem:[%s2995_s30 + $0x10] sm:$0xff]  }
  0x1c   : > { %2438 = vmatprep.mubr.msk.bf16.mxu0 %vm606_vm0, %v2738_v3  ;;  %v2746_v8 = vld [vmem:[%s2995_s30 + $0x40] sm:$0xff]   ;;  %v2747_v10 = vld [vmem:[%s2995_s30 + $0x48] sm:$0xff]   ;;  %v2748_v11 = vld [vmem:[%s2995_s30 + $0x50] sm:$0xff]  }
  0x1d   : > { %2437 = vmatpush3.bf16.msra.mxu0 %v2737_v4  ;;  %2661 = vmatpush3.bf16.msra.mxu1 %v2737_v4  ;;  %v2741_v13 = vld [vmem:[%s2995_s30 + $0x18] sm:$0xff]   ;;  %v2742_v14 = vld [vmem:[%s2995_s30 + $0x20] sm:$0xff]   ;;  %v2743_v19 = vld [vmem:[%s2995_s30 + $0x28] sm:$0xff]  }
  0x1e   : > { %2470 = vmatprep.subr.bf16.mxu1 %v2754_v5  ;;  %2454 = vmatprep.mubr.msk.bf16.mxu1 %vm606_vm0, %v2746_v8  ;;  %v2749_v15 = vld [vmem:[%s2995_s30 + $0x58] sm:$0xff]   ;;  %v2750_v16 = vld [vmem:[%s2995_s30 + $0x60] sm:$0xff]   ;;  %v2751_v20 = vld [vmem:[%s2995_s30 + $0x68] sm:$0xff]  }
  0x1f   : > { %v2744_v21 = vld [vmem:[%s2995_s30 + $0x30] sm:$0xff]   ;;  %v2745_v24 = vld [vmem:[%s2995_s30 + $0x38] sm:$0xff]   ;;  %v2766_v30 = vld [vmem:[%s3042_s16] sm:$0xff]   ;;  %2518 = vmatprep.subr.bf16.mxu0 %v2762_v28 }
  0x20   : > { %2439 = vmatmul.mubr.msk.bf16.vlgmr.msra.gmra.mrb[0].mxu0 %vm606_vm0, %v2739_v6  ;;  %2455 = vmatmul.mubr.msk.bf16.vlgmr.msra.gmra.mrb[0].mxu1 %vm606_vm0, %v2747_v10  ;;  %v2752_v22 = vld [vmem:[%s2995_s30 + $0x70] sm:$0xff]   ;;  %v2753_v25 = vld [vmem:[%s2995_s30 + $0x78] sm:$0xff]   ;;  %v2768_v34 = vld [vmem:[%s3042_s16 + $0x8] sm:$0xff]  }
  0x21   : > { %2442 = vmatprep.mubr.msk.bf16.mxu0 %vm606_vm0, %v2740_v7  ;;  %2458 = vmatprep.mubr.msk.bf16.mxu1 %vm606_vm0, %v2748_v11  ;;  %v2769_v35 = vld [vmem:[%s3042_s16 + $0x10] sm:$0xff]   ;;  %v2771_v38 = vld [vmem:[%s3042_s16 + $0x18] sm:$0xff]   ;;  %v2772_v39 = vld [vmem:[%s3042_s16 + $0x20] sm:$0xff]  }
  0x22   : > { %2471 = vmatpush3.bf16.msra.mxu1 %v2754_v5  ;;  %2519 = vmatpush3.bf16.msra.mxu0 %v2762_v28  ;;  %v2774_v42 = vld [vmem:[%s3042_s16 + $0x28] sm:$0xff]   ;;  %v2775_v43 = vld [vmem:[%s3042_s16 + $0x30] sm:$0xff]   ;;  %v2777_v46 = vld [vmem:[%s3042_s16 + $0x38] sm:$0xff]  }
  0x23   : > { %2472 = vmatprep.subr.bf16.mxu1 %v2755_v9  ;;  %2520 = vmatprep.subr.bf16.mxu0 %v2763_v29  ;;  %v2778_v47 = vld [vmem:[%s3042_s16 + $0x40] sm:$0xff]   ;;  %v2780_v48 = vld [vmem:[%s3042_s16 + $0x48] sm:$0xff]   ;;  %v2781_v49 = vld [vmem:[%s3042_s16 + $0x50] sm:$0xff]  }
  0x24   : > { %v2783_v50 = vld [vmem:[%s3042_s16 + $0x58] sm:$0xff]   ;;  %v2784_v51 = vld [vmem:[%s3042_s16 + $0x60] sm:$0xff]   ;;  %v2786_v59 = vld [vmem:[%s3042_s16 + $0x68] sm:$0xff]  }
  0x26   : > { %2473 = vmatpush3.bf16.msra.mxu1 %v2755_v9  ;;  %2521 = vmatpush3.bf16.msra.mxu0 %v2763_v29 }
  0x27   : > { %2474 = vmatprep.subr.bf16.mxu1 %v2756_v12  ;;  %2522 = vmatprep.subr.bf16.mxu0 %v2764_v31 }
  0x28   : > { %2443 = vmatmul.mubr.msk.bf16.gmra.mrb[4].mxu0 %vm606_vm0, %v2741_v13  ;;  %2459 = vmatmul.mubr.msk.bf16.gmra.mrb[4].mxu1 %vm606_vm0, %v2749_v15 }
  0x29   : > { %2446 = vmatprep.mubr.msk.bf16.mxu0 %vm606_vm0, %v2742_v14  ;;  %2462 = vmatprep.mubr.msk.bf16.mxu1 %vm606_vm0, %v2750_v16 }
  0x2a   : > { %2475 = vmatpush3.bf16.msra.mxu1 %v2756_v12  ;;  %2523 = vmatpush3.bf16.msra.mxu0 %v2764_v31 }
  0x2b   : > { %2476 = vmatprep.subr.bf16.mxu1 %v2757_v17  ;;  %2524 = vmatprep.subr.bf16.mxu0 %v2765_v32 }
  0x2e   : > { %2477 = vmatpush3.bf16.msra.mxu1 %v2757_v17  ;;  %2525 = vmatpush3.bf16.msra.mxu0 %v2765_v32 }
  0x2f   : > { %2478 = vmatprep.subr.bf16.mxu1 %v2758_v18  ;;  %2558 = vmatprep.subr.bf16.mxu0 %v2767_v33 }
  0x30   : > { %2447 = vmatmul.mubr.msk.bf16.gmra.mrb[8].mxu0 %vm606_vm0, %v2743_v19  ;;  %2463 = vmatmul.mubr.msk.bf16.gmra.mrb[8].mxu1 %vm606_vm0, %v2751_v20 }
  0x31   : > { %2450 = vmatprep.mubr.msk.bf16.mxu0 %vm606_vm0, %v2744_v21  ;;  %2466 = vmatprep.mubr.msk.bf16.mxu1 %vm606_vm0, %v2752_v22 }
  0x32   : > { %2479 = vmatpush3.bf16.msra.mxu1 %v2758_v18 }
  0x33   : > { %2480 = vmatprep.subr.bf16.mxu1 %v2759_v23 }
  0x36   : > { %2481 = vmatpush3.bf16.msra.mxu1 %v2759_v23 }
  0x37   : > { %2482 = vmatprep.subr.bf16.mxu1 %v2760_v26 }
  0x38   : > { %2451 = vmatmul.mubr.msk.bf16.gmra.mrb[12].mxu0 %vm606_vm0, %v2745_v24  ;;  %2467 = vmatmul.mubr.msk.bf16.gmra.mrb[12].mxu1 %vm606_vm0, %v2753_v25 }
  0x39   : > { %2526 = vmatprep.mubr.msk.bf16.mxu0 %vm606_vm0, %v2766_v30 }
  0x3a   : > { %2483 = vmatpush3.bf16.msra.mxu1 %v2760_v26 }
  0x3b   : > { %2484 = vmatprep.subr.bf16.mxu1 %v2761_v27 }
  0x3e   : > { %2485 = vmatpush3.bf16.msra.mxu1 %v2761_v27 }
  0x40   : > { %2527 = vmatmul.mubr.msk.bf16.vlgmr.msra.gmra.mrb[16].mxu0 %vm606_vm0, %v2768_v34 }
  0x41   : > { %2559 = vmatpush3.bf16.msra.mxu0 %v2767_v33  ;;  %2530 = vmatprep.mubr.msk.bf16.mxu0 %vm606_vm0, %v2769_v35 }
  0x42   : > { %2560 = vmatprep.subr.bf16.mxu0 %v2770_v36 }
  0x45   : > { %2561 = vmatpush3.bf16.msra.mxu0 %v2770_v36 }
  0x46   : > { %2562 = vmatprep.subr.bf16.mxu0 %v2773_v37 }
  0x48   : > { %2531 = vmatmul.mubr.msk.bf16.gmra.mrb[20].mxu0 %vm606_vm0, %v2771_v38 }
  0x49   : > { %2534 = vmatprep.mubr.msk.bf16.mxu0 %vm606_vm0, %v2772_v39  ;;  %2563 = vmatpush3.bf16.msra.mxu0 %v2773_v37 }
  0x4a   : > { %2564 = vmatprep.subr.bf16.mxu0 %v2776_v40 }
  0x4d   : > { %2565 = vmatpush3.bf16.msra.mxu0 %v2776_v40 }
  0x4e   : > { %2566 = vmatprep.subr.bf16.mxu0 %v2779_v41 }
  0x50   : > { %2535 = vmatmul.mubr.msk.bf16.gmra.mrb[24].mxu0 %vm606_vm0, %v2774_v42 }
  0x51   : > { %2538 = vmatprep.mubr.msk.bf16.mxu0 %vm606_vm0, %v2775_v43  ;;  %2567 = vmatpush3.bf16.msra.mxu0 %v2779_v41 }
  0x52   : > { %2568 = vmatprep.subr.bf16.mxu0 %v2782_v44 }
  0x55   : > { %2569 = vmatpush3.bf16.msra.mxu0 %v2782_v44 }
  0x56   : > { %2570 = vmatprep.subr.bf16.mxu0 %v2785_v45 }
  0x58   : > { %2539 = vmatmul.mubr.msk.bf16.gmra.mrb[28].mxu0 %vm606_vm0, %v2777_v46 }
  0x59   : > { %2542 = vmatprep.mubr.msk.bf16.mxu0 %vm606_vm0, %v2778_v47  ;;  %2571 = vmatpush3.bf16.msra.mxu0 %v2785_v45 }
  0x60   : > { %2543 = vmatmul.mubr.msk.bf16.gmra.mrb[32].mxu0 %vm606_vm0, %v2780_v48 }
  0x61   : > { %2546 = vmatprep.mubr.msk.bf16.mxu0 %vm606_vm0, %v2781_v49 }
  0x68   : > { %2547 = vmatmul.mubr.msk.bf16.gmra.mrb[36].mxu0 %vm606_vm0, %v2783_v50 }
  0x69   : > { %2550 = vmatprep.mubr.msk.bf16.mxu0 %vm606_vm0, %v2784_v51 }
  0x70   : > { %2551 = vmatmul.mubr.msk.bf16.gmra.mrb[40].mxu0 %vm606_vm0, %v2786_v59 }
  0xf3   : > { %v2440_v53 = vpop.f32.mrb[0].mxu0  ;;  %v2456_v54 = vpop.f32.mrb[0].mxu1 }
  0xf4   : > { %v698_v55 = vadd.f32 %v2440_v53, %v3124_v52  ;;  %v689_v56 = vpop.f32.mrb[1].mxu0  ;;  %v762_v57 = vadd.f32 %v2456_v54, %v3124_v52  ;;  %v753_v58 = vpop.f32.mrb[1].mxu1 }
  0xf5   : > { %v690_v60 = vadd.f32 %v3124_v52, %v689_v56  ;;  %v2441_v61 = vpop.f32.mrb[2].mxu0  ;;  %v754_v62 = vadd.f32 %v3124_v52, %v753_v58  ;;  %v2457_v63 = vpop.f32.mrb[2].mxu1 }
  0xf6   : > { %v701_v0 = vadd.f32 %v2441_v61, %v3124_v52  ;;  %v692_v1 = vpop.f32.mrb[3].mxu0  ;;  %v834_v2 = vmax.f32 %v762_v57, 0.0  ;;  %v765_v3 = vadd.f32 %v2457_v63, %v3124_v52  ;;  %v756_v4 = vpop.f32.mrb[3].mxu1  ;;  %v818_v8 = vmax.f32 %v698_v55, 0.0 }
  0xf7   : > { %v693_v5 = vadd.f32 %v3124_v52, %v692_v1  ;;  %v832_v6 = vmax.f32 %v754_v62, 0.0  ;;  %v757_v7 = vadd.f32 %v3124_v52, %v756_v4  ;;  %v816_v11 = vmax.f32 %v690_v60, 0.0 }
  0xf8   : > { %v819_v9 = vmax.f32 %v701_v0, 0.0  ;;  %v835_v10 = vmax.f32 %v765_v3, 0.0 }
  0xf9   : > { %v817_v12 = vmax.f32 %v693_v5, 0.0  ;;  %v833_v13 = vmax.f32 %v757_v7, 0.0 }
  0xfa   : > { %v849_v14 = vpack.c.bf16 %v819_v9, %v818_v8  ;;  %v3137_v15 = vpack.c.bf16 %v835_v10, %v834_v2 }
  0xfb   : > { %v848_v16 = vpack.c.bf16 %v817_v12, %v816_v11  ;;  %v2444_v17 = vpop.f32.mrb[4].mxu0  ;;  %v3139_v18 = vpack.c.bf16 %v833_v13, %v832_v6  ;;  %v2460_v19 = vpop.f32.mrb[4].mxu1 }
  0xfc   : > { %v714_v20 = vadd.f32 %v2444_v17, %v3124_v52  ;;  %v705_v21 = vpop.f32.mrb[5].mxu0  ;;  %v778_v22 = vadd.f32 %v2460_v19, %v3124_v52  ;;  %v769_v23 = vpop.f32.mrb[5].mxu1 }
  0xfd   : > { %v706_v24 = vadd.f32 %v3124_v52, %v705_v21  ;;  %v2445_v25 = vpop.f32.mrb[6].mxu0  ;;  %2486 = vmatprep.mubr.bf16.mxu1 %v848_v16  ;;  %v770_v26 = vadd.f32 %v3124_v52, %v769_v23  ;;  %v2461_v27 = vpop.f32.mrb[6].mxu1 }
  0xfe   : > { %v717_v28 = vadd.f32 %v2445_v25, %v3124_v52  ;;  %v708_v29 = vpop.f32.mrb[7].mxu0  ;;  %2487 = vmatmul.mubr.bf16.vlgmr.msra.gmra.mrb[16].mxu1 %v849_v14  ;;  %v838_v30 = vmax.f32 %v778_v22, 0.0  ;;  %v781_v31 = vadd.f32 %v2461_v27, %v3124_v52  ;;  %v772_v32 = vpop.f32.mrb[7].mxu1  ;;  %v822_v36 = vmax.f32 %v714_v20, 0.0 }
  0xff   : > { %v709_v33 = vadd.f32 %v3124_v52, %v708_v29  ;;  %v836_v34 = vmax.f32 %v770_v26, 0.0  ;;  %v773_v35 = vadd.f32 %v3124_v52, %v772_v32  ;;  %v820_v39 = vmax.f32 %v706_v24, 0.0 }
 0x100   : > { %v823_v37 = vmax.f32 %v717_v28, 0.0  ;;  %v839_v38 = vmax.f32 %v781_v31, 0.0 }
 0x101   : > { %v821_v40 = vmax.f32 %v709_v33, 0.0  ;;  %v837_v41 = vmax.f32 %v773_v35, 0.0 }
 0x102   : > { %v851_v42 = vpack.c.bf16 %v823_v37, %v822_v36  ;;  %v3149_v43 = vpack.c.bf16 %v839_v38, %v838_v30 }
 0x103   : > { %v850_v44 = vpack.c.bf16 %v821_v40, %v820_v39  ;;  %v2448_v45 = vpop.f32.mrb[8].mxu0  ;;  %v3151_v46 = vpack.c.bf16 %v837_v41, %v836_v34  ;;  %v2464_v47 = vpop.f32.mrb[8].mxu1  ;;  %v2789_v41 = vld [vmem:[%s3042_s16 + $0x78] sm:$0xff]  }
 0x104   : > { %v730_v48 = vadd.f32 %v2448_v45, %v3124_v52  ;;  %v721_v49 = vpop.f32.mrb[9].mxu0  ;;  %v794_v50 = vadd.f32 %v2464_v47, %v3124_v52  ;;  %v785_v51 = vpop.f32.mrb[9].mxu1  ;;  %v2794_v45 = vld [vmem:[%s3424_s9 + $0x20] sm:$0xff]   ;;  %v2796_v47 = vld [vmem:[%s3424_s9 + $0x30] sm:$0xff]  }
 0x105   : > { %v722_v53 = vadd.f32 %v3124_v52, %v721_v49  ;;  %v2449_v54 = vpop.f32.mrb[10].mxu0  ;;  %2490 = vmatprep.mubr.bf16.mxu1 %v850_v44  ;;  %v786_v55 = vadd.f32 %v3124_v52, %v785_v51  ;;  %v2465_v56 = vpop.f32.mrb[10].mxu1  ;;  %v2793_v44 = vld [vmem:[%s3424_s9 + $0x18] sm:$0xff]  }
 0x106   : > { %v733_v57 = vadd.f32 %v2449_v54, %v3124_v52  ;;  %v724_v58 = vpop.f32.mrb[11].mxu0  ;;  %2491 = vmatmul.mubr.bf16.gmra.mrb[20].mxu1 %v851_v42  ;;  %v842_v59 = vmax.f32 %v794_v50, 0.0  ;;  %v797_v60 = vadd.f32 %v2465_v56, %v3124_v52  ;;  %v788_v61 = vpop.f32.mrb[11].mxu1  ;;  %v826_v1 = vmax.f32 %v730_v48, 0.0  ;;  %v2791_v42 = vld [vmem:[%s3424_s9 + $0x8] sm:$0xff]  }
 0x107   : > { %v725_v62 = vadd.f32 %v3124_v52, %v724_v58  ;;  %v840_v63 = vmax.f32 %v786_v55, 0.0  ;;  %v789_v0 = vadd.f32 %v3124_v52, %v788_v61  ;;  %v824_v4 = vmax.f32 %v722_v53, 0.0  ;;  %v3204_v48 = vld [vmem:[%s3420_s5] ss:$0 sm:$0xff] }
 0x108   : > { %v827_v2 = vmax.f32 %v733_v57, 0.0  ;;  %v843_v3 = vmax.f32 %v797_v60, 0.0 }
 0x109   : > { %v825_v5 = vmax.f32 %v725_v62, 0.0  ;;  %v841_v6 = vmax.f32 %v789_v0, 0.0 }
 0x10a   : > { %v853_v7 = vpack.c.bf16 %v827_v2, %v826_v1  ;;  %v861_v8 = vpack.c.bf16 %v843_v3, %v842_v59 }
 0x10b   : > { %v852_v9 = vpack.c.bf16 %v825_v5, %v824_v4  ;;  %v2452_v10 = vpop.f32.mrb[12].mxu0  ;;  %v860_v11 = vpack.c.bf16 %v841_v6, %v840_v63  ;;  %v2468_v12 = vpop.f32.mrb[12].mxu1 }
 0x10c   : > { %v746_v13 = vadd.f32 %v2452_v10, %v3124_v52  ;;  %v737_v14 = vpop.f32.mrb[13].mxu0  ;;  %v810_v16 = vadd.f32 %v2468_v12, %v3124_v52  ;;  %v801_v17 = vpop.f32.mrb[13].mxu1 }
 0x10d   : > { %v738_v19 = vadd.f32 %v3124_v52, %v737_v14  ;;  %v2453_v20 = vpop.f32.mrb[14].mxu0  ;;  %2494 = vmatprep.mubr.bf16.mxu1 %v852_v9  ;;  %v802_v21 = vadd.f32 %v3124_v52, %v801_v17  ;;  %v2469_v22 = vpop.f32.mrb[14].mxu1 }
 0x10e   : > { %v749_v23 = vadd.f32 %v2453_v20, %v3124_v52  ;;  %v740_v24 = vpop.f32.mrb[15].mxu0  ;;  %2495 = vmatmul.mubr.bf16.gmra.mrb[24].mxu1 %v853_v7  ;;  %v846_v25 = vmax.f32 %v810_v16, 0.0  ;;  %v813_v26 = vadd.f32 %v2469_v22, %v3124_v52  ;;  %v804_v27 = vpop.f32.mrb[15].mxu1  ;;  %v830_v31 = vmax.f32 %v746_v13, 0.0 }
 0x10f   : > { %v741_v28 = vadd.f32 %v3124_v52, %v740_v24  ;;  %v844_v29 = vmax.f32 %v802_v21, 0.0  ;;  %v805_v30 = vadd.f32 %v3124_v52, %v804_v27  ;;  %v828_v34 = vmax.f32 %v738_v19, 0.0  ;;  %v2787_v52 = vld [vmem:[%s3042_s16 + $0x70] sm:$0xff]   ;;  %s3290_s16 = scalar_lea.vmem [#allocation2], %s2203_s13 }
 0x110   : > { %v831_v32 = vmax.f32 %v749_v23, 0.0  ;;  %v847_v33 = vmax.f32 %v813_v26, 0.0  ;;  %2554 = vmatprep.mubr.msk.bf16.mxu0 %vm606_vm0, %v2787_v52 }
 0x111   : > { %v829_v35 = vmax.f32 %v741_v28, 0.0  ;;  %v845_v36 = vmax.f32 %v805_v30, 0.0  ;;  %2555 = vmatmul.mubr.msk.bf16.gmra.mrb[44].mxu0 %vm606_vm0, %v2789_v41 }
 0x112   : > { %v855_v37 = vpack.c.bf16 %v831_v32, %v830_v31  ;;  %v863_v38 = vpack.c.bf16 %v847_v33, %v846_v25 }
 0x113   : > { %v854_v39 = vpack.c.bf16 %v829_v35, %v828_v34  ;;  %v862_v40 = vpack.c.bf16 %v845_v36, %v844_v29 }
 0x115   : > { %2498 = vmatprep.mubr.bf16.mxu1 %v854_v39 }
 0x116   : > { %2499 = vmatmul.mubr.bf16.gmra.mrb[28].mxu1 %v855_v37 }
 0x117   : > { %2502 = vmatprep.mubr.bf16.mxu1 %v3139_v18  ;;  %v2788_v18 = vld [vmem:[%s3421_s6 + $0x38] sm:$0xff]  }
 0x118   : > { %2572 = vmatprep.subr.bf16.mxu0 %v2788_v18 }
 0x119   : > { %2573 = vmatpush3.bf16.msra.mxu0 %v2788_v18 }
 0x11e   : > { %2503 = vmatmul.mubr.bf16.gmra.mrb[32].mxu1 %v3137_v15  ;;  %v2790_v15 = vld [vmem:[%s3424_s9] sm:$0xff]  }
 0x11f   : > { %2506 = vmatprep.mubr.bf16.mxu1 %v3151_v46  ;;  %2606 = vmatprep.subr.bf16.mxu1 %v2790_v15  ;;  %v2795_v46 = vld [vmem:[%s3424_s9 + $0x28] sm:$0xff]  }
 0x120   : > { %2607 = vmatpush3.bf16.msra.mxu1 %v2790_v15 }
 0x121   : > { %2608 = vmatprep.subr.bf16.mxu1 %v2791_v42 }
 0x124   : > { %2609 = vmatpush3.bf16.msra.mxu1 %v2791_v42 }
 0x126   : > { %2507 = vmatmul.mubr.bf16.gmra.mrb[36].mxu1 %v3149_v43  ;;  %v2792_v43 = vld [vmem:[%s3424_s9 + $0x10] sm:$0xff]  }
 0x127   : > { %2510 = vmatprep.mubr.bf16.mxu1 %v860_v11  ;;  %2610 = vmatprep.subr.bf16.mxu1 %v2792_v43 }
 0x128   : > { %2611 = vmatpush3.bf16.msra.mxu1 %v2792_v43 }
 0x129   : > { %2612 = vmatprep.subr.bf16.mxu1 %v2793_v44 }
 0x12c   : > { %2613 = vmatpush3.bf16.msra.mxu1 %v2793_v44 }
 0x12d   : > { %2614 = vmatprep.subr.bf16.mxu1 %v2794_v45 }
 0x12e   : > { %2511 = vmatmul.mubr.bf16.gmra.mrb[40].mxu1 %v861_v8 }
 0x12f   : > { %2514 = vmatprep.mubr.bf16.mxu1 %v862_v40 }
 0x130   : > { %2615 = vmatpush3.bf16.msra.mxu1 %v2794_v45 }
 0x131   : > { %2616 = vmatprep.subr.bf16.mxu1 %v2795_v46 }
 0x134   : > { %2617 = vmatpush3.bf16.msra.mxu1 %v2795_v46 }
 0x135   : > { %2618 = vmatprep.subr.bf16.mxu1 %v2796_v47 }
 0x136   : > { %2515 = vmatmul.mubr.bf16.gmra.mrb[44].mxu1 %v863_v38 }
 0x138   : > { %2619 = vmatpush3.bf16.msra.mxu1 %v2796_v47 }
 0x1d1   : > { %v2488_v49 = vpop.f32.mrb[16].mxu1 }
 0x1d2   : > { %v978_v50 = vadd.f32 %v2488_v49, %v3204_v48  ;;  %v969_v51 = vpop.f32.mrb[17].mxu1 }
 0x1d3   : > { %v970_v53 = vadd.f32 %v3204_v48, %v969_v51  ;;  %v2489_v54 = vpop.f32.mrb[18].mxu1 }
 0x1d4   : > { %v981_v55 = vadd.f32 %v2489_v54, %v3204_v48  ;;  %v972_v56 = vpop.f32.mrb[19].mxu1  ;;  %v1098_v58 = vmax.f32 %v978_v50, 0.0 }
 0x1d5   : > { %v973_v57 = vadd.f32 %v3204_v48, %v972_v56  ;;  %v1096_v60 = vmax.f32 %v970_v53, 0.0 }
 0x1d6   : > { %v1099_v59 = vmax.f32 %v981_v55, 0.0 }
 0x1d7   : > { %v1097_v61 = vmax.f32 %v973_v57, 0.0 }
 0x1d8   : > { %v1129_v62 = vpack.c.bf16 %v1099_v59, %v1098_v58 }
 0x1d9   : > { %v1128_v63 = vpack.c.bf16 %v1097_v61, %v1096_v60  ;;  %v2492_v0 = vpop.f32.mrb[20].mxu1 }
 0x1da   : > { %v994_v1 = vadd.f32 %v2492_v0, %v3204_v48  ;;  %v985_v2 = vpop.f32.mrb[21].mxu1 }
 0x1db   : > { %v986_v3 = vadd.f32 %v3204_v48, %v985_v2  ;;  %v2493_v4 = vpop.f32.mrb[22].mxu1  ;;  %2574 = vmatprep.mubr.bf16.mxu0 %v1128_v63 }
 0x1dc   : > { %v997_v5 = vadd.f32 %v2493_v4, %v3204_v48  ;;  %v988_v6 = vpop.f32.mrb[23].mxu1  ;;  %2575 = vmatmul.mubr.bf16.vlgmr.msra.gmra.mrb[16].mxu0 %v1129_v62  ;;  %v1102_v8 = vmax.f32 %v994_v1, 0.0 }
 0x1dd   : > { %v989_v7 = vadd.f32 %v3204_v48, %v988_v6  ;;  %v1100_v10 = vmax.f32 %v986_v3, 0.0 }
 0x1de   : > { %v1103_v9 = vmax.f32 %v997_v5, 0.0 }
 0x1df   : > { %v1101_v11 = vmax.f32 %v989_v7, 0.0 }
 0x1e0   : > { %v1131_v12 = vpack.c.bf16 %v1103_v9, %v1102_v8 }
 0x1e1   : > { %v1130_v13 = vpack.c.bf16 %v1101_v11, %v1100_v10  ;;  %v2496_v14 = vpop.f32.mrb[24].mxu1 }
 0x1e2   : > { %v1010_v16 = vadd.f32 %v2496_v14, %v3204_v48  ;;  %v1001_v17 = vpop.f32.mrb[25].mxu1 }
 0x1e3   : > { %v1002_v19 = vadd.f32 %v3204_v48, %v1001_v17  ;;  %v2497_v20 = vpop.f32.mrb[26].mxu1  ;;  %2578 = vmatprep.mubr.bf16.mxu0 %v1130_v13 }
 0x1e4   : > { %v1013_v21 = vadd.f32 %v2497_v20, %v3204_v48  ;;  %v1004_v22 = vpop.f32.mrb[27].mxu1  ;;  %2579 = vmatmul.mubr.bf16.gmra.mrb[20].mxu0 %v1131_v12  ;;  %v1106_v24 = vmax.f32 %v1010_v16, 0.0 }
 0x1e5   : > { %v1005_v23 = vadd.f32 %v3204_v48, %v1004_v22  ;;  %v1104_v26 = vmax.f32 %v1002_v19, 0.0 }
 0x1e6   : > { %v1107_v25 = vmax.f32 %v1013_v21, 0.0 }
 0x1e7   : > { %v1105_v27 = vmax.f32 %v1005_v23, 0.0 }
 0x1e8   : > { %v1133_v28 = vpack.c.bf16 %v1107_v25, %v1106_v24 }
 0x1e9   : > { %v1132_v29 = vpack.c.bf16 %v1105_v27, %v1104_v26  ;;  %v2500_v30 = vpop.f32.mrb[28].mxu1 }
 0x1ea   : > { %v1026_v31 = vadd.f32 %v2500_v30, %v3204_v48  ;;  %v1017_v32 = vpop.f32.mrb[29].mxu1 }
 0x1eb   : > { %v1018_v33 = vadd.f32 %v3204_v48, %v1017_v32  ;;  %v2501_v34 = vpop.f32.mrb[30].mxu1  ;;  %2582 = vmatprep.mubr.bf16.mxu0 %v1132_v29 }
 0x1ec   : > { %v1029_v35 = vadd.f32 %v2501_v34, %v3204_v48  ;;  %v1020_v36 = vpop.f32.mrb[31].mxu1  ;;  %2583 = vmatmul.mubr.bf16.gmra.mrb[24].mxu0 %v1133_v28  ;;  %v1110_v38 = vmax.f32 %v1026_v31, 0.0 }
 0x1ed   : > { %v1021_v37 = vadd.f32 %v3204_v48, %v1020_v36  ;;  %v1108_v40 = vmax.f32 %v1018_v33, 0.0 }
 0x1ee   : > { %v1111_v39 = vmax.f32 %v1029_v35, 0.0 }
 0x1ef   : > { %v1109_v52 = vmax.f32 %v1021_v37, 0.0  ;;  %v2797_v37 = vld [vmem:[%s3424_s9 + $0x38] sm:$0xff]  }
 0x1f0   : > { %v1135_v41 = vpack.c.bf16 %v1111_v39, %v1110_v38  ;;  %2620 = vmatprep.subr.bf16.mxu1 %v2797_v37  ;;  %v3244_v38 = vld [vmem:[%s3423_s8] ss:$0 sm:$0xff] }
 0x1f1   : > { %v1134_v18 = vpack.c.bf16 %v1109_v52, %v1108_v40  ;;  %v2504_v15 = vpop.f32.mrb[32].mxu1  ;;  %2621 = vmatpush3.bf16.msra.mxu1 %v2797_v37 }
 0x1f2   : > { %v1042_v42 = vadd.f32 %v2504_v15, %v3204_v48  ;;  %v1033_v43 = vpop.f32.mrb[33].mxu1 }
 0x1f3   : > { %v1034_v44 = vadd.f32 %v3204_v48, %v1033_v43  ;;  %v2505_v45 = vpop.f32.mrb[34].mxu1  ;;  %2586 = vmatprep.mubr.bf16.mxu0 %v1134_v18 }
 0x1f4   : > { %v1045_v46 = vadd.f32 %v2505_v45, %v3204_v48  ;;  %v1036_v47 = vpop.f32.mrb[35].mxu1  ;;  %2587 = vmatmul.mubr.bf16.gmra.mrb[28].mxu0 %v1135_v41  ;;  %v1114_v50 = vmax.f32 %v1042_v42, 0.0 }
 0x1f5   : > { %v1037_v49 = vadd.f32 %v3204_v48, %v1036_v47  ;;  %v1112_v53 = vmax.f32 %v1034_v44, 0.0 }
 0x1f6   : > { %v1115_v51 = vmax.f32 %v1045_v46, 0.0 }
 0x1f7   : > { %v1113_v54 = vmax.f32 %v1037_v49, 0.0 }
 0x1f8   : > { %v1137_v55 = vpack.c.bf16 %v1115_v51, %v1114_v50 }
 0x1f9   : > { %v1136_v56 = vpack.c.bf16 %v1113_v54, %v1112_v53  ;;  %v2508_v57 = vpop.f32.mrb[36].mxu1 }
 0x1fa   : > { %v1058_v58 = vadd.f32 %v2508_v57, %v3204_v48  ;;  %v1049_v59 = vpop.f32.mrb[37].mxu1 }
 0x1fb   : > { %v1050_v60 = vadd.f32 %v3204_v48, %v1049_v59  ;;  %v2509_v61 = vpop.f32.mrb[38].mxu1  ;;  %2590 = vmatprep.mubr.bf16.mxu0 %v1136_v56 }
 0x1fc   : > { %v1061_v62 = vadd.f32 %v2509_v61, %v3204_v48  ;;  %v1052_v63 = vpop.f32.mrb[39].mxu1  ;;  %2591 = vmatmul.mubr.bf16.gmra.mrb[32].mxu0 %v1137_v55  ;;  %v1118_v1 = vmax.f32 %v1058_v58, 0.0 }
 0x1fd   : > { %v1053_v0 = vadd.f32 %v3204_v48, %v1052_v63  ;;  %v1116_v3 = vmax.f32 %v1050_v60, 0.0 }
 0x1fe   : > { %v1119_v2 = vmax.f32 %v1061_v62, 0.0 }
 0x1ff   : > { %v1117_v4 = vmax.f32 %v1053_v0, 0.0 }
 0x200   : > { %v1139_v5 = vpack.c.bf16 %v1119_v2, %v1118_v1 }
 0x201   : > { %v1138_v6 = vpack.c.bf16 %v1117_v4, %v1116_v3  ;;  %v2512_v7 = vpop.f32.mrb[40].mxu1 }
 0x202   : > { %v1074_v8 = vadd.f32 %v2512_v7, %v3204_v48  ;;  %v1065_v9 = vpop.f32.mrb[41].mxu1 }
 0x203   : > { %v1066_v10 = vadd.f32 %v3204_v48, %v1065_v9  ;;  %v2513_v11 = vpop.f32.mrb[42].mxu1  ;;  %2594 = vmatprep.mubr.bf16.mxu0 %v1138_v6 }
 0x204   : > { %v1077_v12 = vadd.f32 %v2513_v11, %v3204_v48  ;;  %v1068_v13 = vpop.f32.mrb[43].mxu1  ;;  %2595 = vmatmul.mubr.bf16.gmra.mrb[36].mxu0 %v1139_v5  ;;  %v1122_v16 = vmax.f32 %v1074_v8, 0.0 }
 0x205   : > { %v1069_v14 = vadd.f32 %v3204_v48, %v1068_v13  ;;  %v1120_v19 = vmax.f32 %v1066_v10, 0.0 }
 0x206   : > { %v1123_v17 = vmax.f32 %v1077_v12, 0.0 }
 0x207   : > { %v1121_v20 = vmax.f32 %v1069_v14, 0.0 }
 0x208   : > { %v1141_v21 = vpack.c.bf16 %v1123_v17, %v1122_v16 }
 0x209   : > { %v1140_v22 = vpack.c.bf16 %v1121_v20, %v1120_v19  ;;  %v2516_v23 = vpop.f32.mrb[44].mxu1 }
 0x20a   : > { %v1090_v24 = vadd.f32 %v2516_v23, %v3204_v48  ;;  %v1081_v25 = vpop.f32.mrb[45].mxu1 }
 0x20b   : > { %v1082_v26 = vadd.f32 %v3204_v48, %v1081_v25  ;;  %v2517_v27 = vpop.f32.mrb[46].mxu1  ;;  %2598 = vmatprep.mubr.bf16.mxu0 %v1140_v22 }
 0x20c   : > { %v1093_v28 = vadd.f32 %v2517_v27, %v3204_v48  ;;  %v1084_v29 = vpop.f32.mrb[47].mxu1  ;;  %2599 = vmatmul.mubr.bf16.gmra.mrb[40].mxu0 %v1141_v21  ;;  %v1126_v31 = vmax.f32 %v1090_v24, 0.0 }
 0x20d   : > { %v1085_v30 = vadd.f32 %v3204_v48, %v1084_v29  ;;  %v1124_v33 = vmax.f32 %v1082_v26, 0.0 }
 0x20e   : > { %v1127_v32 = vmax.f32 %v1093_v28, 0.0 }
 0x20f   : > { %v1125_v34 = vmax.f32 %v1085_v30, 0.0 }
 0x210   : > { %v1143_v35 = vpack.c.bf16 %v1127_v32, %v1126_v31 }
 0x211   : > { %v1142_v36 = vpack.c.bf16 %v1125_v34, %v1124_v33 }
 0x213   : > { %2602 = vmatprep.mubr.bf16.mxu0 %v1142_v36 }
 0x214   : > { %2603 = vmatmul.mubr.bf16.gmra.mrb[44].mxu0 %v1143_v35 }
 0x2af   : > { %v2576_v48 = vpop.f32.mrb[16].mxu0 }
 0x2b0   : > { %v1731_v39 = vadd.f32 %v2576_v48, %v3244_v38  ;;  %v1595_v40 = vpop.f32.mrb[17].mxu0 }
 0x2b1   : > { %v1729_v52 = vadd.f32 %v3244_v38, %v1595_v40  ;;  %v2577_v41 = vpop.f32.mrb[18].mxu0 }
 0x2b2   : > { %v1732_v18 = vadd.f32 %v2577_v41, %v3244_v38  ;;  %v1598_v15 = vpop.f32.mrb[19].mxu0  ;;  %v1763_v43 = vmax.f32 %v1731_v39, 0.0 }
 0x2b3   : > { %v1730_v42 = vadd.f32 %v3244_v38, %v1598_v15  ;;  %v1761_v45 = vmax.f32 %v1729_v52, 0.0 }
 0x2b4   : > { %v1764_v44 = vmax.f32 %v1732_v18, 0.0 }
 0x2b5   : > { %v1762_v46 = vmax.f32 %v1730_v42, 0.0 }
 0x2b6   : > { %v1794_v47 = vpack.c.bf16 %v1764_v44, %v1763_v43 }
 0x2b7   : > { %v1793_v49 = vpack.c.bf16 %v1762_v46, %v1761_v45  ;;  %v2580_v50 = vpop.f32.mrb[20].mxu0 }
 0x2b8   : > { %v1735_v51 = vadd.f32 %v2580_v50, %v3244_v38  ;;  %v1611_v53 = vpop.f32.mrb[21].mxu0 }
 0x2b9   : > { %v1733_v54 = vadd.f32 %v3244_v38, %v1611_v53  ;;  %v2581_v55 = vpop.f32.mrb[22].mxu0  ;;  %2622 = vmatprep.mubr.bf16.mxu1 %v1793_v49 }
 0x2ba   : > { %v1736_v56 = vadd.f32 %v2581_v55, %v3244_v38  ;;  %v1614_v57 = vpop.f32.mrb[23].mxu0  ;;  %2623 = vmatmul.mubr.bf16.vlgmr.msra.gmra.mrb[48].mxu1 %v1794_v47  ;;  %v1767_v59 = vmax.f32 %v1735_v51, 0.0 }
 0x2bb   : > { %v1734_v58 = vadd.f32 %v3244_v38, %v1614_v57  ;;  %v1765_v61 = vmax.f32 %v1733_v54, 0.0 }
 0x2bc   : > { %v1768_v60 = vmax.f32 %v1736_v56, 0.0 }
 0x2bd   : > { %v1766_v62 = vmax.f32 %v1734_v58, 0.0 }
 0x2be   : > { %v1796_v63 = vpack.c.bf16 %v1768_v60, %v1767_v59 }
 0x2bf   : > { %v1795_v0 = vpack.c.bf16 %v1766_v62, %v1765_v61  ;;  %v2584_v1 = vpop.f32.mrb[24].mxu0 }
 0x2c0   : > { %v1739_v2 = vadd.f32 %v2584_v1, %v3244_v38  ;;  %v1627_v3 = vpop.f32.mrb[25].mxu0 }
 0x2c1   : > { %v1737_v4 = vadd.f32 %v3244_v38, %v1627_v3  ;;  %v2585_v5 = vpop.f32.mrb[26].mxu0  ;;  %2626 = vmatprep.mubr.bf16.mxu1 %v1795_v0 }
 0x2c2   : > { %v1740_v6 = vadd.f32 %v2585_v5, %v3244_v38  ;;  %v1630_v7 = vpop.f32.mrb[27].mxu0  ;;  %2627 = vmatmul.mubr.bf16.gmra.mrb[52].mxu1 %v1796_v63  ;;  %v1771_v9 = vmax.f32 %v1739_v2, 0.0 }
 0x2c3   : > { %v1738_v8 = vadd.f32 %v3244_v38, %v1630_v7  ;;  %v1769_v11 = vmax.f32 %v1737_v4, 0.0 }
 0x2c4   : > { %v1772_v10 = vmax.f32 %v1740_v6, 0.0 }
 0x2c5   : > { %v1770_v12 = vmax.f32 %v1738_v8, 0.0 }
 0x2c6   : > { %v1798_v13 = vpack.c.bf16 %v1772_v10, %v1771_v9 }
 0x2c7   : > { %v1797_v14 = vpack.c.bf16 %v1770_v12, %v1769_v11  ;;  %v2588_v16 = vpop.f32.mrb[28].mxu0 }
 0x2c8   : > { %v1743_v17 = vadd.f32 %v2588_v16, %v3244_v38  ;;  %v1643_v19 = vpop.f32.mrb[29].mxu0 }
 0x2c9   : > { %v1741_v20 = vadd.f32 %v3244_v38, %v1643_v19  ;;  %v2589_v21 = vpop.f32.mrb[30].mxu0  ;;  %2630 = vmatprep.mubr.bf16.mxu1 %v1797_v14 }
 0x2ca   : > { %v1744_v22 = vadd.f32 %v2589_v21, %v3244_v38  ;;  %v1646_v23 = vpop.f32.mrb[31].mxu0  ;;  %2631 = vmatmul.mubr.bf16.gmra.mrb[56].mxu1 %v1798_v13  ;;  %v1775_v25 = vmax.f32 %v1743_v17, 0.0 }
 0x2cb   : > { %v1742_v24 = vadd.f32 %v3244_v38, %v1646_v23  ;;  %v1773_v27 = vmax.f32 %v1741_v20, 0.0 }
 0x2cc   : > { %v1776_v26 = vmax.f32 %v1744_v22, 0.0 }
 0x2cd   : > { %v1774_v28 = vmax.f32 %v1742_v24, 0.0  ;;  %v3282_v24 = vld [vmem:[%s3425_s10] ss:$0 sm:$0xff] }
 0x2ce   : > { %v1800_v29 = vpack.c.bf16 %v1776_v26, %v1775_v25 }
 0x2cf   : > { %v1799_v30 = vpack.c.bf16 %v1774_v28, %v1773_v27  ;;  %v2592_v31 = vpop.f32.mrb[32].mxu0 }
 0x2d0   : > { %v1747_v32 = vadd.f32 %v2592_v31, %v3244_v38  ;;  %v1659_v33 = vpop.f32.mrb[33].mxu0 }
 0x2d1   : > { %v1745_v34 = vadd.f32 %v3244_v38, %v1659_v33  ;;  %v2593_v35 = vpop.f32.mrb[34].mxu0  ;;  %2634 = vmatprep.mubr.bf16.mxu1 %v1799_v30 }
 0x2d2   : > { %v1748_v36 = vadd.f32 %v2593_v35, %v3244_v38  ;;  %v1662_v37 = vpop.f32.mrb[35].mxu0  ;;  %2635 = vmatmul.mubr.bf16.gmra.mrb[60].mxu1 %v1800_v29  ;;  %v1779_v39 = vmax.f32 %v1747_v32, 0.0 }
 0x2d3   : > { %v1746_v48 = vadd.f32 %v3244_v38, %v1662_v37  ;;  %v1777_v52 = vmax.f32 %v1745_v34, 0.0 }
 0x2d4   : > { %v1780_v40 = vmax.f32 %v1748_v36, 0.0 }
 0x2d5   : > { %v1778_v41 = vmax.f32 %v1746_v48, 0.0 }
 0x2d6   : > { %v1802_v18 = vpack.c.bf16 %v1780_v40, %v1779_v39 }
 0x2d7   : > { %v1801_v15 = vpack.c.bf16 %v1778_v41, %v1777_v52  ;;  %v2596_v42 = vpop.f32.mrb[36].mxu0 }
 0x2d8   : > { %v1751_v43 = vadd.f32 %v2596_v42, %v3244_v38  ;;  %v1675_v44 = vpop.f32.mrb[37].mxu0 }
 0x2d9   : > { %v1749_v45 = vadd.f32 %v3244_v38, %v1675_v44  ;;  %v2597_v46 = vpop.f32.mrb[38].mxu0  ;;  %2638 = vmatprep.mubr.bf16.mxu1 %v1801_v15 }
 0x2da   : > { %v1752_v47 = vadd.f32 %v2597_v46, %v3244_v38  ;;  %v1678_v49 = vpop.f32.mrb[39].mxu0  ;;  %2639 = vmatmul.mubr.bf16.gmra.mrb[64].mxu1 %v1802_v18  ;;  %v1783_v51 = vmax.f32 %v1751_v43, 0.0 }
 0x2db   : > { %v1750_v50 = vadd.f32 %v3244_v38, %v1678_v49  ;;  %v1781_v54 = vmax.f32 %v1749_v45, 0.0 }
 0x2dc   : > { %v1784_v53 = vmax.f32 %v1752_v47, 0.0 }
 0x2dd   : > { %v1782_v55 = vmax.f32 %v1750_v50, 0.0 }
 0x2de   : > { %v1804_v56 = vpack.c.bf16 %v1784_v53, %v1783_v51 }
 0x2df   : > { %v1803_v57 = vpack.c.bf16 %v1782_v55, %v1781_v54  ;;  %v2600_v58 = vpop.f32.mrb[40].mxu0 }
 0x2e0   : > { %v1755_v59 = vadd.f32 %v2600_v58, %v3244_v38  ;;  %v1691_v60 = vpop.f32.mrb[41].mxu0 }
 0x2e1   : > { %v1753_v61 = vadd.f32 %v3244_v38, %v1691_v60  ;;  %v2601_v62 = vpop.f32.mrb[42].mxu0  ;;  %2642 = vmatprep.mubr.bf16.mxu1 %v1803_v57 }
 0x2e2   : > { %v1756_v63 = vadd.f32 %v2601_v62, %v3244_v38  ;;  %v1694_v0 = vpop.f32.mrb[43].mxu0  ;;  %2643 = vmatmul.mubr.bf16.gmra.mrb[68].mxu1 %v1804_v56  ;;  %v1787_v2 = vmax.f32 %v1755_v59, 0.0 }
 0x2e3   : > { %v1754_v1 = vadd.f32 %v3244_v38, %v1694_v0  ;;  %v1785_v4 = vmax.f32 %v1753_v61, 0.0 }
 0x2e4   : > { %v1788_v3 = vmax.f32 %v1756_v63, 0.0 }
 0x2e5   : > { %v1786_v5 = vmax.f32 %v1754_v1, 0.0 }
 0x2e6   : > { %v1806_v6 = vpack.c.bf16 %v1788_v3, %v1787_v2 }
 0x2e7   : > { %v1805_v7 = vpack.c.bf16 %v1786_v5, %v1785_v4  ;;  %v2604_v8 = vpop.f32.mrb[44].mxu0 }
 0x2e8   : > { %v1759_v9 = vadd.f32 %v2604_v8, %v3244_v38  ;;  %v1707_v10 = vpop.f32.mrb[45].mxu0 }
 0x2e9   : > { %v1757_v11 = vadd.f32 %v3244_v38, %v1707_v10  ;;  %v2605_v12 = vpop.f32.mrb[46].mxu0  ;;  %2646 = vmatprep.mubr.bf16.mxu1 %v1805_v7 }
 0x2ea   : > { %v1760_v13 = vadd.f32 %v2605_v12, %v3244_v38  ;;  %v1710_v14 = vpop.f32.mrb[47].mxu0  ;;  %2647 = vmatmul.mubr.bf16.gmra.mrb[72].mxu1 %v1806_v6  ;;  %v1791_v17 = vmax.f32 %v1759_v9, 0.0 }
 0x2eb   : > { %v1758_v16 = vadd.f32 %v3244_v38, %v1710_v14  ;;  %v1789_v20 = vmax.f32 %v1757_v11, 0.0 }
 0x2ec   : > { %v1792_v19 = vmax.f32 %v1760_v13, 0.0 }
 0x2ed   : > { %v1790_v21 = vmax.f32 %v1758_v16, 0.0 }
 0x2ee   : > { %v1808_v22 = vpack.c.bf16 %v1792_v19, %v1791_v17 }
 0x2ef   : > { %v1807_v23 = vpack.c.bf16 %v1790_v21, %v1789_v20 }
 0x2f1   : > { %2650 = vmatprep.mubr.bf16.mxu1 %v1807_v23 }
 0x2f2   : > { %2651 = vmatmul.mubr.bf16.gmra.mrb[76].mxu1 %v1808_v22 }
 0x38d   : > { %v2624_v25 = vpop.f32.mrb[48].mxu1 }
 0x38e   : > { %v1923_v26 = vadd.f32 %v2624_v25, %v3282_v24  ;;  %v1914_v38 = vpop.f32.mrb[49].mxu1 }
 0x38f   : > { %v1915_v27 = vadd.f32 %v3282_v24, %v1914_v38  ;;  %v2625_v28 = vpop.f32.mrb[50].mxu1 }
 0x390   : > { %v2043_v29 = vmax.f32 %v1923_v26, 0.0  ;;  %v1926_v30 = vadd.f32 %v2625_v28, %v3282_v24  ;;  %v1917_v31 = vpop.f32.mrb[51].mxu1 }
 0x391   : > { %v2041_v32 = vmax.f32 %v1915_v27, 0.0  ;;  %v1918_v33 = vadd.f32 %v3282_v24, %v1917_v31 }
 0x392   : > { %2075 = vst [vmem:[%s3290_s16 + $0x10] sm:$0xff] %v2043_v29  ;;  %v2044_v34 = vmax.f32 %v1926_v30, 0.0 }
 0x393   : > { %2073 = vst [vmem:[%s3290_s16] sm:$0xff] %v2041_v32  ;;  %v2042_v35 = vmax.f32 %v1918_v33, 0.0 }
 0x394   : > { %2076 = vst [vmem:[%s3290_s16 + $0x18] sm:$0xff] %v2044_v34 }
 0x395   : > { %2074 = vst [vmem:[%s3290_s16 + $0x8] sm:$0xff] %v2042_v35  ;;  %v2628_v36 = vpop.f32.mrb[52].mxu1 }
 0x396   : > { %v1939_v37 = vadd.f32 %v2628_v36, %v3282_v24  ;;  %v1930_v48 = vpop.f32.mrb[53].mxu1 }
 0x397   : > { %v1931_v39 = vadd.f32 %v3282_v24, %v1930_v48  ;;  %v2629_v40 = vpop.f32.mrb[54].mxu1 }
 0x398   : > { %v2047_v52 = vmax.f32 %v1939_v37, 0.0  ;;  %v1942_v41 = vadd.f32 %v2629_v40, %v3282_v24  ;;  %v1933_v18 = vpop.f32.mrb[55].mxu1 }
 0x399   : > { %v2045_v15 = vmax.f32 %v1931_v39, 0.0  ;;  %v1934_v42 = vadd.f32 %v3282_v24, %v1933_v18 }
 0x39a   : > { %2079 = vst [vmem:[%s3290_s16 + $0x30] sm:$0xff] %v2047_v52  ;;  %v2048_v43 = vmax.f32 %v1942_v41, 0.0 }
 0x39b   : > { %2077 = vst [vmem:[%s3290_s16 + $0x20] sm:$0xff] %v2045_v15  ;;  %v2046_v44 = vmax.f32 %v1934_v42, 0.0 }
 0x39c   : > { %2080 = vst [vmem:[%s3290_s16 + $0x38] sm:$0xff] %v2048_v43 }
 0x39d   : > { %2078 = vst [vmem:[%s3290_s16 + $0x28] sm:$0xff] %v2046_v44  ;;  %v2632_v45 = vpop.f32.mrb[56].mxu1 }
 0x39e   : > { %v1955_v46 = vadd.f32 %v2632_v45, %v3282_v24  ;;  %v1946_v47 = vpop.f32.mrb[57].mxu1 }
 0x39f   : > { %v1947_v49 = vadd.f32 %v3282_v24, %v1946_v47  ;;  %v2633_v50 = vpop.f32.mrb[58].mxu1 }
 0x3a0   : > { %v2051_v51 = vmax.f32 %v1955_v46, 0.0  ;;  %v1958_v53 = vadd.f32 %v2633_v50, %v3282_v24  ;;  %v1949_v54 = vpop.f32.mrb[59].mxu1 }
 0x3a1   : > { %v2049_v55 = vmax.f32 %v1947_v49, 0.0  ;;  %v1950_v56 = vadd.f32 %v3282_v24, %v1949_v54 }
 0x3a2   : > { %2083 = vst [vmem:[%s3290_s16 + $0x50] sm:$0xff] %v2051_v51  ;;  %v2052_v57 = vmax.f32 %v1958_v53, 0.0 }
 0x3a3   : > { %2081 = vst [vmem:[%s3290_s16 + $0x40] sm:$0xff] %v2049_v55  ;;  %v2050_v58 = vmax.f32 %v1950_v56, 0.0 }
 0x3a4   : > { %2084 = vst [vmem:[%s3290_s16 + $0x58] sm:$0xff] %v2052_v57 }
 0x3a5   : > { %2082 = vst [vmem:[%s3290_s16 + $0x48] sm:$0xff] %v2050_v58  ;;  %v2636_v59 = vpop.f32.mrb[60].mxu1 }
 0x3a6   : > { %v1971_v60 = vadd.f32 %v2636_v59, %v3282_v24  ;;  %v1962_v61 = vpop.f32.mrb[61].mxu1 }
 0x3a7   : > { %v1963_v62 = vadd.f32 %v3282_v24, %v1962_v61  ;;  %v2637_v63 = vpop.f32.mrb[62].mxu1 }
 0x3a8   : > { %v2055_v0 = vmax.f32 %v1971_v60, 0.0  ;;  %v1974_v1 = vadd.f32 %v2637_v63, %v3282_v24  ;;  %v1965_v2 = vpop.f32.mrb[63].mxu1 }
 0x3a9   : > { %v2053_v3 = vmax.f32 %v1963_v62, 0.0  ;;  %v1966_v4 = vadd.f32 %v3282_v24, %v1965_v2 }
 0x3aa   : > { %2087 = vst [vmem:[%s3290_s16 + $0x70] sm:$0xff] %v2055_v0  ;;  %v2056_v5 = vmax.f32 %v1974_v1, 0.0 }
 0x3ab   : > { %2085 = vst [vmem:[%s3290_s16 + $0x60] sm:$0xff] %v2053_v3  ;;  %v2054_v6 = vmax.f32 %v1966_v4, 0.0 }
 0x3ac   : > { %2088 = vst [vmem:[%s3290_s16 + $0x78] sm:$0xff] %v2056_v5 }
 0x3ad   : > { %2086 = vst [vmem:[%s3290_s16 + $0x68] sm:$0xff] %v2054_v6  ;;  %v2640_v7 = vpop.f32.mrb[64].mxu1 }
 0x3ae   : > { %v1987_v8 = vadd.f32 %v2640_v7, %v3282_v24  ;;  %v1978_v9 = vpop.f32.mrb[65].mxu1 }
 0x3af   : > { %v1979_v10 = vadd.f32 %v3282_v24, %v1978_v9  ;;  %v2641_v11 = vpop.f32.mrb[66].mxu1 }
 0x3b0   : > { %v2059_v12 = vmax.f32 %v1987_v8, 0.0  ;;  %v1990_v13 = vadd.f32 %v2641_v11, %v3282_v24  ;;  %v1981_v14 = vpop.f32.mrb[67].mxu1 }
 0x3b1   : > { %v2057_v16 = vmax.f32 %v1979_v10, 0.0  ;;  %v1982_v17 = vadd.f32 %v3282_v24, %v1981_v14 }
 0x3b2   : > { %2091 = vst [vmem:[%s3290_s16 + $0x90] sm:$0xff] %v2059_v12  ;;  %v2060_v19 = vmax.f32 %v1990_v13, 0.0 }
 0x3b3   : > { %2089 = vst [vmem:[%s3290_s16 + $0x80] sm:$0xff] %v2057_v16  ;;  %v2058_v20 = vmax.f32 %v1982_v17, 0.0 }
 0x3b4   : > { %2092 = vst [vmem:[%s3290_s16 + $0x98] sm:$0xff] %v2060_v19 }
 0x3b5   : > { %2090 = vst [vmem:[%s3290_s16 + $0x88] sm:$0xff] %v2058_v20  ;;  %v2644_v21 = vpop.f32.mrb[68].mxu1 }
 0x3b6   : > { %v2003_v22 = vadd.f32 %v2644_v21, %v3282_v24  ;;  %v1994_v23 = vpop.f32.mrb[69].mxu1 }
 0x3b7   : > { %v1995_v25 = vadd.f32 %v3282_v24, %v1994_v23  ;;  %v2645_v26 = vpop.f32.mrb[70].mxu1 }
 0x3b8   : > { %v2063_v38 = vmax.f32 %v2003_v22, 0.0  ;;  %v2006_v27 = vadd.f32 %v2645_v26, %v3282_v24  ;;  %v1997_v28 = vpop.f32.mrb[71].mxu1 }
 0x3b9   : > { %v2061_v29 = vmax.f32 %v1995_v25, 0.0  ;;  %v1998_v30 = vadd.f32 %v3282_v24, %v1997_v28 }
 0x3ba   : > { %2095 = vst [vmem:[%s3290_s16 + $0xb0] sm:$0xff] %v2063_v38  ;;  %v2064_v31 = vmax.f32 %v2006_v27, 0.0 }
 0x3bb   : > { %2093 = vst [vmem:[%s3290_s16 + $0xa0] sm:$0xff] %v2061_v29  ;;  %v2062_v32 = vmax.f32 %v1998_v30, 0.0 }
 0x3bc   : > { %2096 = vst [vmem:[%s3290_s16 + $0xb8] sm:$0xff] %v2064_v31 }
 0x3bd   : > { %2094 = vst [vmem:[%s3290_s16 + $0xa8] sm:$0xff] %v2062_v32  ;;  %v2648_v33 = vpop.f32.mrb[72].mxu1 }
 0x3be   : > { %v2019_v34 = vadd.f32 %v2648_v33, %v3282_v24  ;;  %v2010_v35 = vpop.f32.mrb[73].mxu1 }
 0x3bf   : > { %v2011_v36 = vadd.f32 %v3282_v24, %v2010_v35  ;;  %v2649_v37 = vpop.f32.mrb[74].mxu1 }
 0x3c0   : > { %v2067_v48 = vmax.f32 %v2019_v34, 0.0  ;;  %v2022_v39 = vadd.f32 %v2649_v37, %v3282_v24  ;;  %v2013_v40 = vpop.f32.mrb[75].mxu1 }
 0x3c1   : > { %v2065_v52 = vmax.f32 %v2011_v36, 0.0  ;;  %v2014_v41 = vadd.f32 %v3282_v24, %v2013_v40 }
 0x3c2   : > { %2099 = vst [vmem:[%s3290_s16 + $0xd0] sm:$0xff] %v2067_v48  ;;  %v2068_v18 = vmax.f32 %v2022_v39, 0.0 }
 0x3c3   : > { %2097 = vst [vmem:[%s3290_s16 + $0xc0] sm:$0xff] %v2065_v52  ;;  %v2066_v15 = vmax.f32 %v2014_v41, 0.0 }
 0x3c4   : > { %2100 = vst [vmem:[%s3290_s16 + $0xd8] sm:$0xff] %v2068_v18 }
 0x3c5   : > { %2098 = vst [vmem:[%s3290_s16 + $0xc8] sm:$0xff] %v2066_v15  ;;  %v2652_v42 = vpop.f32.mrb[76].mxu1 }
 0x3c6   : > { %v2035_v43 = vadd.f32 %v2652_v42, %v3282_v24  ;;  %v2026_v44 = vpop.f32.mrb[77].mxu1 }
 0x3c7   : > { %v2027_v45 = vadd.f32 %v3282_v24, %v2026_v44  ;;  %v2653_v46 = vpop.f32.mrb[78].mxu1  ;;  %2112 = sbr.rel (!%p2963_p5) target bundleno = 1002 (0x3ea), region = 68 }
 0x3c8   : > { %v2071_v47 = vmax.f32 %v2035_v43, 0.0  ;;  %v2038_v49 = vadd.f32 %v2653_v46, %v3282_v24  ;;  %v2029_v50 = vpop.f32.mrb[79].mxu1 }
 0x3c9   : > { %v2069_v51 = vmax.f32 %v2027_v45, 0.0  ;;  %v2030_v53 = vadd.f32 %v3282_v24, %v2029_v50 }
 0x3ca   : > { %2103 = vst [vmem:[%s3290_s16 + $0xf0] sm:$0xff] %v2071_v47  ;;  %v2072_v54 = vmax.f32 %v2038_v49, 0.0 }
 0x3cb   : > { %2101 = vst [vmem:[%s3290_s16 + $0xe0] sm:$0xff] %v2069_v51  ;;  %v2070_v55 = vmax.f32 %v2030_v53, 0.0 }
 0x3cc   : > { %2104 = vst [vmem:[%s3290_s16 + $0xf8] sm:$0xff] %v2072_v54 }
 0x3cd   : > { %2102 = vst [vmem:[%s3290_s16 + $0xe8] sm:$0xff] %v2070_v55 }
 0x3ce   : > { %s3436_s22 = smov (!%p2115_p11, %s2114_s22), 32 }
 0x3cf   : > { %s3359_s0 = sshll.u32 %s3436_s22, 7 }
 0x3d0   : > { %s2119_s15 = ssub.s32 4096, %s3359_s0 }
 0x3d1   : > { %2120 = vsyncadd %s3354_s14, %s2119_s15  ;;  %p2311_p12 = scmp.ne.s32.totalorder %s3359_s0, 0  ;;  %s2317_s24 = sshll.u32 %s2946_s21, 12 }
 0x3d2   : > { %s3368_s30 = scalar_lea.hbm %s3426_s11, %s2317_s24  ;;  %s2125_s12 = sshll.u32 %s3290_s16, 4  ;;  %s3371_s12 = int_to_ptr.vmem [resolvable:$true] %s2125_s12 }
 0x3d3   : > { %s2798_s29 = scalar_lea.vmem %s3371_s12, %s3359_s0  ;;  %s2862_s13 = smov [#allocation2]  }
 0x3d4   : > { %p2799_p13 = scmp.ne.s32.totalorder %s3371_s12, %s2798_s29  ;;  %s2802_s22 = sshll.u32 %s2862_s13, 4  ;;  %s2803_s22 = int_to_ptr.vmem [resolvable:$false] %s2802_s22 }
 0x3d5   : > { %s2804_s21 = scalar_lea.vmem %s2803_s22, 8192  ;;  %p2805_p2 = scmp.lt.s32.totalorder %s3371_s12, %s2803_s22 }
 0x3d6   : > { %p2800_p0 = pnand %p2799_p13, %p2311_p12  ;;  %p2806_p3 = scmp.lt.s32.totalorder %s2804_s21, %s2798_s29 }
 0x3d8   : > { %p2801_p1 = pneg %p2800_p0  ;;  %p2807_p4 = por %p2806_p3, %p2805_p2 }
 0x3da   : > { %p2808_p5 = pnand %p2807_p4, %p2801_p1 }
 0x3dc   : > { %2811 = shalt.err (!%p2808_p5)
}
 0x3dd   : > { %s2812_s16 = scalar_lea.hbm %s3368_s30, %s3359_s0  ;;  %s2816_s25 = scalar_lea.hbm %s3426_s11, 8064 }
 0x3de   : > { %p2813_p7 = scmp.ne.s32.totalorder %s3368_s30, %s2812_s16  ;;  %p2817_p10 = scmp.lt.u32.totalorder %s3368_s30, %s3426_s11 }
 0x3df   : > { %p2818_p11 = scmp.lt.u32.totalorder %s2816_s25, %s2812_s16  ;;  %p2820_p0 = scmp.lt.u32.totalorder %s2812_s16, %s3368_s30 }
 0x3e0   : > { %p2814_p8 = pnand %p2813_p7, %p2311_p12 }
 0x3e1   : > { %p2819_p13 = por %p2818_p11, %p2817_p10 }
 0x3e2   : > { %p2815_p9 = pneg %p2814_p8 }
 0x3e3   : > { %p2821_p1 = por %p2820_p0, %p2819_p13 }
 0x3e5   : > { %p2822_p2 = pnand %p2821_p1, %p2815_p9 }
 0x3e7   : > { %2825 = shalt.err (!%p2822_p2)
}
 0x3e8   : > { %s2863_s13 = smov 128   ;;  %s2864_s22 = smov 8  }
 0x3e9   : > { %2131 = dma.vmem_to_hbm [thread:$0]  (%p2311_p12), %s3371_s12, %s3359_s0, %s3368_s30, %s3354_s14, %s2863_s13, %s2863_s13, %s2864_s22  }
 0x3ea PF: > { %p2699_p3 = scmp.ge.s32.totalorder %s2860_s20, 2  ;;  %s2140_s21 = sand.u32 1, %s2848_s17  }
 0x3eb   : > { %s2141_s16 = scalar_lea.sflag [#allocation3], %s2140_s21 }
 0x3ec   : > { %p2696_p4 = pnand %p2699_p3, %p2967_p6 }
 0x3ee   : > { %2843 = dma.done.wait (!%p2696_p4), %s2141_s16, 4096  }
 0x3ef   : > { %2845 = vsyncadd (!%p2696_p4), %s2141_s16, 4294963200  ;;  %p21_p5 = scmp.ge.s32.totalorder %s2950_s23, 4   ;;  %s3431_s17 = smov %s2852_s18 }
 0x3f0   : > { %s3432_s18 = smov %s2856_s19  ;;  %s3433_s19 = smov %s2961_s26 }
 0x3f1   : > { %s3434_s20 = smov %s2950_s23  ;;  %23 = sbr.rel (!%p21_p5) target bundleno = 5 (0x5), region = 102 }
 0x3f8   :  { %2146 = vsyncpa [#allocation3], 1 }
 0x3f9   :  { %2148 = vsyncpa [#allocation3 + $0x1], 1 }

</bundles_post_ra>
